<compile_context>
chip_gen: v7x
topology: tpu7x:2x2x1
jax: 0.10.0
libtpu: 0.0.40
codegen_flags: <defaults>
</compile_context>

<pallas_src>
import jax
import jax.numpy as jnp
from jax import lax
from jax.experimental import pallas as pl
from jax.experimental.pallas import tpu as pltpu


# ----------------------------------------------------------------------------
# helpers
# ----------------------------------------------------------------------------
def _pick_tile(dim, target, align):
    """Largest power-of-two tile <= target that divides `dim` and respects the
    (8, 128) TPU block alignment; otherwise fall back to the full dimension
    (block == array dim is always legal)."""
    if dim <= target:
        return dim
    t = target
    while t >= align:
        if dim % t == 0:
            return t
        t //= 2
    return dim


def _vmem_limit(est_bytes):
    """Explicit scoped-VMEM limit: 2x headroom over the per-step estimate,
    floored at 16 MiB (v5e default) and capped at 64 MiB (v7x physical)."""
    return int(min(max(2 * est_bytes, 16 * 1024 * 1024), 64 * 1024 * 1024))


# ----------------------------------------------------------------------------
# Tiled linear (x @ w.T + b), nn.Linear weight layout (N, K)
# ----------------------------------------------------------------------------
def _linear_kernel(x_ref, w_ref, b_ref, o_ref, acc_ref):
    # x_ref: (tm, tk), w_ref: (tn, tk), b_ref: (1, tn) f32, o_ref: (tm, tn)
    k = pl.program_id(2)

    @pl.when(k == 0)
    def _():
        acc_ref[...] = jnp.zeros(acc_ref.shape, acc_ref.dtype)

    # Contract the K axes directly -- the MXU consumes the transposed RHS
    # natively, no .T / XLU transpose per grid step.
    acc_ref[...] += lax.dot_general(
        x_ref[...], w_ref[...],
        dimension_numbers=(((1,), (1,)), ((), ())),
        preferred_element_type=jnp.float32)

    @pl.when(k == pl.num_programs(2) - 1)
    def _():
        o_ref[...] = (acc_ref[...] + b_ref[...]).astype(o_ref.dtype)


def pallas_linear(x2d, w, b, *, out_dtype=None, mxu_dtype=jnp.bfloat16,
                  tm=256, tn=256, tk=512):
    """x2d: (M, K), w: (N, K), b: (N,) -> (M, N).

    Tile targets 256/256/512 suit the 256-wide MXU on v6e/v7x; pass tm=tn=128
    on v5e (4x128^2 MXU). Operands are fed to the MXU in `mxu_dtype`
    (bf16 by default); accumulation and the bias add stay f32.
    """
    M, K = x2d.shape
    N, K2 = w.shape
    assert K == K2, (x2d.shape, w.shape)
    out_dtype = out_dtype or x2d.dtype

    if mxu_dtype is not None:
        x2d = x2d.astype(mxu_dtype)
        w = w.astype(mxu_dtype)
    b2d = b.astype(jnp.float32).reshape(1, N)

    tm = _pick_tile(M, tm, 8)
    tn = _pick_tile(N, tn, 128)
    tk = _pick_tile(K, tk, 128)
    grid = (M // tm, N // tn, K // tk)

    in_bytes = jnp.dtype(x2d.dtype).itemsize
    est = (2 * (tm * tk + tn * tk) * in_bytes              # double-buffered x/w
           + 2 * tm * tn * jnp.dtype(out_dtype).itemsize   # double-buffered out
           + tm * tn * 4 + 2 * tn * 4)                     # f32 acc + bias

    return pl.pallas_call(
        _linear_kernel,
        out_shape=jax.ShapeDtypeStruct((M, N), out_dtype),
        grid_spec=pltpu.PrefetchScalarGridSpec(
            num_scalar_prefetch=0,
            grid=grid,
            in_specs=[
                pl.BlockSpec((tm, tk), lambda i, j, k: (i, k)),
                pl.BlockSpec((tn, tk), lambda i, j, k: (j, k)),
                pl.BlockSpec((1, tn), lambda i, j, k: (0, j)),
            ],
            out_specs=pl.BlockSpec((tm, tn), lambda i, j, k: (i, j)),
            scratch_shapes=[pltpu.VMEM((tm, tn), jnp.float32)]),
        compiler_params=pltpu.CompilerParams(
            dimension_semantics=("parallel", "parallel", "arbitrary"),
            vmem_limit_bytes=_vmem_limit(est)),
    )(x2d, w, b2d)


# ----------------------------------------------------------------------------
# Flash-style causal attention (online softmax), scale = 1/head_dim
# ----------------------------------------------------------------------------
def _flash_attn_kernel(q_ref, k_ref, v_ref, o_ref, m_ref, l_ref, acc_ref):
    # q_ref: (1, tq, D), k_ref/v_ref: (1, tkv, D) with tq == tkv.
    qi = pl.program_id(1)
    ki = pl.program_id(2)

    @pl.when(ki == 0)
    def _():
        m_ref[...] = jnp.full(m_ref.shape, -jnp.inf, m_ref.dtype)
        l_ref[...] = jnp.zeros(l_ref.shape, l_ref.dtype)
        acc_ref[...] = jnp.zeros(acc_ref.shape, acc_ref.dtype)

    def update(on_diagonal):
        q = q_ref[0]                              # (tq, D)
        k = k_ref[0]                              # (tkv, D)
        v = v_ref[0]                              # (tkv, D)
        tq, d = q.shape
        tkv = k.shape[0]

        qs = q * (1.0 / d)                        # muP scale 1/D folded into q
        s = lax.dot_general(                      # (tq, tkv) = q @ k.T (f32 acc)
            qs, k, dimension_numbers=(((1,), (1,)), ((), ())),
            preferred_element_type=jnp.float32)

        if on_diagonal:                           # mask only on diagonal tiles
            row = qi * tq + lax.broadcasted_iota(jnp.int32, (tq, tkv), 0)
            col = ki * tkv + lax.broadcasted_iota(jnp.int32, (tq, tkv), 1)
            s = jnp.where(col > row, -jnp.inf, s)

        m_prev = m_ref[...]
        m_new = jnp.maximum(m_prev, jnp.max(s, axis=-1, keepdims=True))
        alpha = jnp.exp(m_prev - m_new)
        p = jnp.exp(s - m_new)
        l_ref[...] = alpha * l_ref[...] + jnp.sum(p, axis=-1, keepdims=True)
        acc_ref[...] = alpha * acc_ref[...] + lax.dot_general(
            p.astype(v.dtype), v,
            dimension_numbers=(((1,), (0,)), ((), ())),
            preferred_element_type=jnp.float32)
        m_ref[...] = m_new

    @pl.when(ki == qi)          # diagonal tile: needs the causal mask
    def _():
        update(True)

    @pl.when(ki < qi)           # strictly below the diagonal: unmasked
    def _():
        update(False)
    # ki > qi: fully above the diagonal -> no compute (and no DMA, see index_map)

    @pl.when(ki == pl.num_programs(2) - 1)
    def _():
        inv_l = pl.reciprocal(l_ref[...], approx=True)   # EUP slot, ~free
        o_ref[0] = (acc_ref[...] * inv_l).astype(o_ref.dtype)


def flash_causal_attention(q, k, v, *, out_dtype=None, tq=256):
    """q, k, v: (B*H, T, D) -> (B*H, T, D). Online-softmax causal attention."""
    BH, T, D = q.shape
    out_dtype = out_dtype or q.dtype
    tq = _pick_tile(T, tq, 8)
    tkv = tq                       # equal tiles keep the diagonal test simple
    grid = (BH, T // tq, T // tkv)

    q_spec = pl.BlockSpec((1, tq, D), lambda bh, qi, ki: (bh, qi, 0))
    # min(ki, qi): kv tiles above the diagonal map to the same block as the
    # previous step, so the pipeline never re-fetches them (causal DMA skip).
    kv_spec = pl.BlockSpec((1, tkv, D),
                           lambda bh, qi, ki: (bh, jnp.minimum(ki, qi), 0))
    o_spec = pl.BlockSpec((1, tq, D), lambda bh, qi, ki: (bh, qi, 0))

    in_bytes = jnp.dtype(q.dtype).itemsize
    est = (2 * (tq * D + 2 * tkv * D) * in_bytes        # double-buffered q/k/v
           + 2 * tq * D * jnp.dtype(out_dtype).itemsize
           + (tq * D + 2 * tq * 128) * 4                # acc + lane-padded m, l
           + 4 * tq * tkv * 4)                          # s / p temporaries

    return pl.pallas_call(
        _flash_attn_kernel,
        out_shape=jax.ShapeDtypeStruct((BH, T, D), out_dtype),
        grid_spec=pltpu.PrefetchScalarGridSpec(
            num_scalar_prefetch=0,
            grid=grid,
            in_specs=[q_spec, kv_spec, kv_spec],
            out_specs=o_spec,
            scratch_shapes=[pltpu.VMEM((tq, 1), jnp.float32),    # m
                            pltpu.VMEM((tq, 1), jnp.float32),    # l
                            pltpu.VMEM((tq, D), jnp.float32)]),  # acc
        compiler_params=pltpu.CompilerParams(
            # B*H collapsed into one leading parallel axis (v7x megacore);
            # kv reduction axis last + arbitrary.
            dimension_semantics=("parallel", "parallel", "arbitrary"),
            vmem_limit_bytes=_vmem_limit(est)),
    )(q, k, v)


# ----------------------------------------------------------------------------
# Module forward (eval mode)
# ----------------------------------------------------------------------------
def causal_self_attention(x, params, n_head, *, mxu_dtype=jnp.bfloat16):
    """Forward pass matching CausalSelfAttention.forward (dropout = identity)."""
    B, T, C = x.shape
    D = C // n_head
    act_dtype = mxu_dtype if mxu_dtype is not None else x.dtype

    # c_attn
    qkv = pallas_linear(x.reshape(B * T, C), params["w_attn"], params["b_attn"],
                        out_dtype=act_dtype, mxu_dtype=mxu_dtype)      # (B*T, 3C)

    # Split heads with one fused transpose: (B,T,3,H,D) -> (3, B*H, T, D).
    # TODO(synk): fold this split/transpose into the attention BlockSpecs
    # (reading q/k/v straight out of the (B, T, 3C) buffer); safe only when
    # D is a multiple of 128 due to the (8, 128) block constraint.
    qkv = qkv.reshape(B, T, 3, n_head, D)
    qkv = jnp.transpose(qkv, (2, 0, 3, 1, 4)).reshape(3, B * n_head, T, D)
    q, k, v = qkv[0], qkv[1], qkv[2]

    y = flash_causal_attention(q, k, v, out_dtype=act_dtype)           # (B*H, T, D)

    # Re-assemble heads: (B*H, T, D) -> (B*T, C)
    y = y.reshape(B, n_head, T, D).transpose(0, 2, 1, 3).reshape(B * T, C)

    # c_proj (output in the input dtype)
    y = pallas_linear(y, params["w_proj"], params["b_proj"],
                      out_dtype=x.dtype, mxu_dtype=mxu_dtype)
    return y.reshape(B, T, C)


# ----------------------------------------------------------------------------
# Deterministic parameter init (mulo_init=True branch of the PyTorch module)
# ----------------------------------------------------------------------------
def init_params(key, n_embd, encoder_var=1.0, dtype=jnp.float32):
    sigma = (encoder_var / n_embd) ** 0.5
    k1, k2, k3, k4 = jax.random.split(key, 4)
    return {
        # nn.Linear stores weight as (out_features, in_features)
        "w_attn": sigma * jax.random.normal(k1, (3 * n_embd, n_embd), dtype),
        "b_attn": 1.0 * jax.random.normal(k2, (3 * n_embd,), dtype),
        "w_proj": sigma * jax.random.normal(k3, (n_embd, n_embd), dtype),
        "b_proj": 1.0 * jax.random.normal(k4, (n_embd,), dtype),
    }


# ----------------------------------------------------------------------------
# Pure-JAX reference (f32) for a loose numerical check
# ----------------------------------------------------------------------------
def _reference(x, params, n_head):
    B, T, C = x.shape
    D = C // n_head
    qkv = x.reshape(B * T, C) @ params["w_attn"].T + params["b_attn"]
    q, k, v = jnp.split(qkv.reshape(B, T, 3 * C), 3, axis=2)
    q = q.reshape(B, T, n_head, D).transpose(0, 2, 1, 3)
    k = k.reshape(B, T, n_head, D).transpose(0, 2, 1, 3)
    v = v.reshape(B, T, n_head, D).transpose(0, 2, 1, 3)
    att = (q @ jnp.swapaxes(k, -1, -2)) * (1.0 / D)
    mask = jnp.tril(jnp.ones((T, T), bool))
    att = jnp.where(mask[None, None], att, -jnp.inf)
    att = jax.nn.softmax(att, axis=-1)
    y = (att @ v).transpose(0, 2, 1, 3).reshape(B * T, C)
    y = y @ params["w_proj"].T + params["b_proj"]
    return y.reshape(B, T, C)


# ----------------------------------------------------------------------------
if __name__ == "__main__":
    B, T, C, H = 2, 8, 32, 4   # block_size = T = 8, head_dim = 8

    key = jax.random.PRNGKey(0)
    kx, kp = jax.random.split(key)
    x = jax.random.normal(kx, (B, T, C), jnp.float32)
    params = init_params(kp, C)

    y = causal_self_attention(x, params, H)
    y = jax.block_until_ready(y)
    assert y.shape == (B, T, C) and y.dtype == jnp.float32

    # Loose check vs the pure-f32 reference (kernel matmuls run in bf16).
    y_ref = _reference(x, params, H)
    rel_err = float(jnp.max(jnp.abs(y - y_ref)) / jnp.max(jnp.abs(y_ref)))
    assert rel_err < 0.1, f"relative error too large: {rel_err}"

    print("KERNEL_OK")
</pallas_src>

<mosaic_0001>
module attributes {stable_mosaic.version = 11 : i64} {
  func.func @_linear_kernel(%arg0: i32, %arg1: i32, %arg2: i32, %arg3: memref<16x32xbf16, #tpu.memory_space<vmem>>, %arg4: memref<96x32xbf16, #tpu.memory_space<vmem>>, %arg5: memref<1x96xf32, #tpu.memory_space<vmem>>, %arg6: memref<16x96xbf16, #tpu.memory_space<vmem>>, %arg7: memref<16x96xf32, #tpu.memory_space<vmem>>) attributes {dimension_semantics = [#tpu.dimension_semantics<parallel>, #tpu.dimension_semantics<parallel>, #tpu.dimension_semantics<arbitrary>], iteration_bounds = array<i64: 1, 1, 1>, scalar_prefetch = 0 : i64, scratch_operands = 1 : i64, tpu.core_type = #tpu.core_type<tc>, window_params = [{transform_indices = @transform_0, window_bounds = array<i64: 16, 32>}, {transform_indices = @transform_1, window_bounds = array<i64: 96, 32>}, {transform_indices = @transform_2, window_bounds = array<i64: 1, 96>}, {transform_indices = @transform_3, window_bounds = array<i64: 16, 96>}]} {
    %c0_i32 = arith.constant 0 : i32
    %0 = arith.cmpi eq, %arg2, %c0_i32 : i32
    %1 = arith.extui %0 : i1 to i32
    %c0_i32_0 = arith.constant 0 : i32
    %2 = arith.cmpi ne, %1, %c0_i32_0 : i32
    scf.if %2 {
      %cst_10 = arith.constant 0.000000e+00 : f32
      %12 = vector.broadcast %cst_10 : f32 to vector<16x96xf32>
      %c0_11 = arith.constant 0 : index
      %c0_12 = arith.constant 0 : index
      %13 = vector.load %arg7[%c0_11, %c0_12] : memref<16x96xf32, #tpu.memory_space<vmem>>, vector<16x96xf32>
      tpu.vector_store %arg7[%c0_11, %c0_12], %12 {strides = array<i32>} : memref<16x96xf32, #tpu.memory_space<vmem>>, vector<16x96xf32>,
    } else {
    }
    %c0 = arith.constant 0 : index
    %c0_1 = arith.constant 0 : index
    %3 = vector.load %arg7[%c0, %c0_1] : memref<16x96xf32, #tpu.memory_space<vmem>>, vector<16x96xf32>
    %c0_2 = arith.constant 0 : index
    %c0_3 = arith.constant 0 : index
    %4 = vector.load %arg3[%c0_2, %c0_3] : memref<16x32xbf16, #tpu.memory_space<vmem>>, vector<16x32xbf16>
    %c0_4 = arith.constant 0 : index
    %c0_5 = arith.constant 0 : index
    %5 = vector.load %arg4[%c0_4, %c0_5] : memref<96x32xbf16, #tpu.memory_space<vmem>>, vector<96x32xbf16>
    %cst = arith.constant dense<0.000000e+00> : vector<16x96xf32>
    %6 = tpu.matmul %4, %5, %cst {dimension_numbers = #tpu.dot_dimension_numbers<[1], [1], [0], [0], [0, 0, 1, 0], [], []>} : vector<16x32xbf16>, vector<96x32xbf16>, vector<16x96xf32> -> vector<16x96xf32>
    %7 = arith.addf %3, %6 : vector<16x96xf32>
    %c0_6 = arith.constant 0 : index
    %c0_7 = arith.constant 0 : index
    %8 = vector.load %arg7[%c0_6, %c0_7] : memref<16x96xf32, #tpu.memory_space<vmem>>, vector<16x96xf32>
    tpu.vector_store %arg7[%c0_6, %c0_7], %7 {strides = array<i32>} : memref<16x96xf32, #tpu.memory_space<vmem>>, vector<16x96xf32>,
    %c0_i32_8 = arith.constant 0 : i32
    %9 = arith.cmpi eq, %arg2, %c0_i32_8 : i32
    %10 = arith.extui %9 : i1 to i32
    %c0_i32_9 = arith.constant 0 : i32
    %11 = arith.cmpi ne, %10, %c0_i32_9 : i32
    scf.if %11 {
      %c0_10 = arith.constant 0 : index
      %c0_11 = arith.constant 0 : index
      %12 = vector.load %arg7[%c0_10, %c0_11] : memref<16x96xf32, #tpu.memory_space<vmem>>, vector<16x96xf32>
      %c0_12 = arith.constant 0 : index
      %c0_13 = arith.constant 0 : index
      %13 = vector.load %arg5[%c0_12, %c0_13] : memref<1x96xf32, #tpu.memory_space<vmem>>, vector<1x96xf32>
      %14 = vector.broadcast %13 : vector<1x96xf32> to vector<16x96xf32>
      %15 = arith.addf %12, %14 : vector<16x96xf32>
      %16 = arith.truncf %15 : vector<16x96xf32> to vector<16x96xbf16>
      %c0_14 = arith.constant 0 : index
      %c0_15 = arith.constant 0 : index
      %17 = vector.load %arg6[%c0_14, %c0_15] : memref<16x96xbf16, #tpu.memory_space<vmem>>, vector<16x96xbf16>
      tpu.vector_store %arg6[%c0_14, %c0_15], %16 {strides = array<i32>} : memref<16x96xbf16, #tpu.memory_space<vmem>>, vector<16x96xbf16>,
    } else {
    }
    return
  }
  func.func @transform_0(%arg0: i32, %arg1: i32, %arg2: i32) -> (i32, i32) {
    %c0_i32 = arith.constant 0 : i32
    return %arg0, %arg2 : i32, i32
  }
  func.func @transform_1(%arg0: i32, %arg1: i32, %arg2: i32) -> (i32, i32) {
    %c0_i32 = arith.constant 0 : i32
    return %arg1, %arg2 : i32, i32
  }
  func.func @transform_2(%arg0: i32, %arg1: i32, %arg2: i32) -> (i32, i32) {
    %c0_i32 = arith.constant 0 : i32
    %c0_i32_0 = arith.constant 0 : i32
    return %c0_i32, %arg1 : i32, i32
  }
  func.func @transform_3(%arg0: i32, %arg1: i32, %arg2: i32) -> (i32, i32) {
    %c0_i32 = arith.constant 0 : i32
    return %arg0, %arg1 : i32, i32
  }
}

</mosaic_0001>

<bundles_post_ra>
// kernel: tpu_custom_call.1
= control target key start
LH: loop header
LB: loop body
LE: loop exit
PB: predicated region body
PF: predicated region fallthrough
CT: control target
= control target key end

     0   :  { %v255_v1 = vmov 0.0   ;;  %vm74_vm0 = vcmask 261120   ;;  %vm256_vm1 = vmmov 0   ;;  %vm20_vm2 = vcmask 785408   ;;  %s327_s0 = inlined_call_operand.vmem [shape: bf16[16,32], index: 0, kind: input, shape index: {}]   ;;  %s328_s1 = inlined_call_operand.vmem [shape: bf16[96,32], index: 1, kind: input, shape index: {}]   ;;  %s329_s2 = inlined_call_operand.vmem [shape: f32[1,96], index: 2, kind: input, shape index: {}]   ;;  %s330_s3 = inlined_call_operand.hbm [shape: bf16[16,96], index: 3, kind: output, shape index: {}]  }
   0x1   :  { %v224_v0 = vld [vmem:[%s328_s1] sm:$0xff]   ;;  %203 = vmatprep.subr.bf16.mxu0 %v255_v1  ;;  %v225_v3 = vld [vmem:[%s328_s1 + $0x8] sm:$0xff]   ;;  %215 = vmatprep.mubr.msk.bf16.mxu0 %vm256_vm1, %v255_v1 }
   0x2   :  { %v79_v2 = vsel %vm74_vm0, %v224_v0, 0 }
   0x3   :  { %204 = vmatpush3.bf16.xpose.msra.mxu0 %v79_v2 }
   0x4   :  { %205 = vmatprep.subr.bf16.mxu0 %v255_v1 }
   0x5   :  { %8 = vsyncpa [#allocation4], 0  ;;  %v82_v4 = vsel %vm74_vm0, %v225_v3, 0  ;;  %21 = vst.msk [vmem:[#allocation2] sm:$0xff] %vm20_vm2, %v255_v1  ;;  %v226_v5 = vld [vmem:[%s328_s1 + $0x10] sm:$0xff]   ;;  %v227_v7 = vld [vmem:[%s328_s1 + $0x18] sm:$0xff]  }
   0x6   :  { %22 = vst.msk [vmem:[#allocation2 + $0x8] sm:$0xff] %vm20_vm2, %v255_v1  ;;  %v85_v6 = vsel %vm74_vm0, %v226_v5, 0  ;;  %v88_v8 = vsel %vm74_vm0, %v227_v7, 0  ;;  %v228_v9 = vld [vmem:[%s328_s1 + $0x20] sm:$0xff]   ;;  %v229_v11 = vld [vmem:[%s328_s1 + $0x28] sm:$0xff]   ;;  %vm164_vm3 = vcmask 781312  }
   0x7   :  { %v91_v10 = vsel %vm74_vm0, %v228_v9, 0  ;;  %v94_v12 = vsel %vm74_vm0, %v229_v11, 0  ;;  %v230_v13 = vld [vmem:[%s327_s0] sm:$0xff]   ;;  %s257_s0 = smov [#allocation3]  }
   0x8   :  { %v191_v22 = vld [vmem:[%s329_s2] ss:$0 sm:$0xff]  ;;  %s172_s27 = sshll.u32 %s257_s0, 4  ;;  %s173_s27 = int_to_ptr.vmem [resolvable:$true] %s172_s27 }
   0x9   :  { %s231_s28 = scalar_lea.vmem %s173_s27, 128  ;;  %p236_p1 = scmp.lt.s32.totalorder %s173_s27, %s173_s27 }
   0xa   :  { %p232_p0 = scmp.ne.s32.totalorder %s173_s27, %s231_s28  ;;  %p237_p2 = scmp.lt.s32.totalorder %s231_s28, %s231_s28 }
   0xb   :  { %206 = vmatpush3.bf16.xpose.msra.mxu0 %v82_v4 }
   0xc   :  { %207 = vmatprep.subr.bf16.mxu0 %v255_v1  ;;  %v23_v14 = vld [vmem:[#allocation2] sm:$0xff]  ;;  %p238_p3 = por %p237_p2, %p236_p1 }
   0xd   :  { %v24_v16 = vld [vmem:[#allocation2 + $0x8] sm:$0xff] }
   0xe   :  { %p239_p4 = pnand %p238_p3, %p232_p0 }
  0x13   :  { %208 = vmatpush3.bf16.xpose.msra.mxu0 %v85_v6 }
  0x14   :  { %209 = vmatprep.subr.bf16.mxu0 %v255_v1 }
  0x1b   :  { %210 = vmatpush3.bf16.xpose.msra.mxu0 %v88_v8 }
  0x1c   :  { %211 = vmatprep.subr.bf16.mxu0 %v255_v1 }
  0x23   :  { %212 = vmatpush3.bf16.xpose.msra.mxu0 %v91_v10 }
  0x24   :  { %213 = vmatprep.subr.bf16.mxu0 %v255_v1 }
  0x2b   :  { %214 = vmatpush3.bf16.xpose.msra.mxu0 %v94_v12 }
  0x32   :  { %216 = vmatmul.mubr.msk.bf16.vlgmr.msra.gmra.mrb[0].mxu0 %vm74_vm0, %v230_v13 }
 0x105   :  { %v130_v15 = vpop.f32.mrb[0].mxu0 }
 0x106   :  { %v137_v17 = vadd.f32 %v130_v15, %v23_v14  ;;  %v217_v18 = vpop.f32.mrb[1].mxu0 }
 0x107   :  { %v133_v19 = vpop.f32.mrb[2].mxu0 }
 0x108   :  { %140 = vst.msk [vmem:[#allocation2] sm:$0xff] %vm20_vm2, %v137_v17  ;;  %v138_v20 = vadd.f32 %v133_v19, %v24_v16  ;;  %v218_v21 = vpop.f32.mrb[3].mxu0 }
 0x10a   :  { %141 = vst.msk [vmem:[#allocation2 + $0x8] sm:$0xff] %vm20_vm2, %v138_v20 }
 0x10f   :  { %v145_v23 = vld [vmem:[#allocation2] sm:$0xff] }
 0x110   :  { %v154_v24 = vadd.f32 %v191_v22, %v145_v23 }
 0x111   :  { %v146_v25 = vld [vmem:[#allocation2 + $0x8] sm:$0xff] }
 0x112   :  { %v155_v26 = vadd.f32 %v191_v22, %v146_v25  ;;  %v194_v27 = vpack.c.bf16 %v154_v24, %v154_v24 }
 0x114   :  { %v195_v28 = vpack.c.bf16 %v155_v26, %v155_v26  ;;  %165 = vst.msk [vmem:[#allocation3] sm:$0xf] %vm164_vm3, %v194_v27 }
 0x116   :  { %166 = vst.msk [vmem:[#allocation3 + $0x4] sm:$0xf] %vm164_vm3, %v195_v28 }
 0x117   :  { %242 = shalt.err (!%p239_p4)
}
 0x118   :  { %s243_s30 = scalar_lea.hbm %s330_s3, 128 }
 0x119   :  { %p244_p5 = scmp.ne.s32.totalorder %s330_s3, %s243_s30  ;;  %p247_p6 = scmp.lt.u32.totalorder %s243_s30, %s330_s3 }
 0x11b   :  { %p249_p7 = pnand %p247_p6, %p244_p5 }
 0x11d   :  { %252 = shalt.err (!%p249_p7)
}
 0x11e   :  { %s258_s8 = smov 64   ;;  %s259_s9 = smov 4  }
 0x11f   :  { %178 = dma.vmem_to_hbm [thread:$0]  %s173_s27, 128, %s330_s3, [#allocation4], %s258_s8, %s258_s8, %s259_s9  }
 0x120   :  { %253 = dma.done.wait [#allocation4], 128  }
 0x121   :  { %254 = vsyncadd [#allocation4], 4294967168 }
 0x122   :  { %182 = vsyncpa [#allocation4], 1 }

</bundles_post_ra>
